<compile_context>
chip_gen: v7x
topology: tpu7x:2x2x1
jax: 0.10.0
libtpu: 0.0.40
codegen_flags: <defaults>
</compile_context>

<pallas_src>
import functools

import numpy as np
import jax
import jax.numpy as jnp
from jax.experimental import pallas as pl
from jax.experimental.pallas import tpu as pltpu


# ---------------------------------------------------------------------------
# Pallas kernel: per-frame embedding matmul + fold (col2im) as tap matmuls.
# ---------------------------------------------------------------------------
def _softcomp_kernel(x_ref, w_ref, f_ref, bias_ref, o_ref, *, C, Q):
    x = x_ref[0]            # (L, D)      bf16   tokens of this frame
    w = w_ref[...]          # (Q*C, D)    bf16   rows ordered (tap, channel)
    bias = bias_ref[...]    # (C, HW)     f32    folded linear bias + module bias

    # Embedding for all taps/channels at once:
    #   y[(q, c), l] = sum_d w[(q, c), d] * x[l, d]        (MXU, f32 accumulate)
    y = jax.lax.dot_general(
        w, x, (((1,), (1,)), ((), ())), preferred_element_type=jnp.float32
    )                                                      # (Q*C, L) f32
    y = y.astype(jnp.bfloat16)

    # Fold / col2im:  out[c, hw] = bias[c, hw] + sum_q sum_l y[(q,c), l] * F[q, l, hw]
    acc = bias                                             # (C, HW) f32
    for q in range(Q):                                     # static unroll, Q = KH*KW
        yq = y[q * C:(q + 1) * C, :]                       # (C, L) contiguous rows
        acc = acc + jax.lax.dot_general(
            yq, f_ref[q], (((1,), (0,)), ((), ())),
            preferred_element_type=jnp.float32)            # (C, HW) f32
    o_ref[0] = acc


# ---------------------------------------------------------------------------
# Fold (col2im) scatter matrix:  F[q, l, h*W + w] = 1 iff sliding window l at
# kernel offset q = kh*KW + kw lands on output pixel (h, w).
# ---------------------------------------------------------------------------
def _fold_matrix(output_size, kernel_size, stride, padding):
    H, W = output_size
    KH, KW = kernel_size
    sh, sw = stride
    ph, pw = padding
    Lh = (H + 2 * ph - KH) // sh + 1
    Lw = (W + 2 * pw - KW) // sw + 1
    L = Lh * Lw
    Q = KH * KW
    F = np.zeros((Q, L, H * W), np.float32)
    for kh in range(KH):
        for kw in range(KW):
            q = kh * KW + kw
            for lh in range(Lh):
                h = lh * sh + kh - ph
                if h < 0 or h >= H:
                    continue
                for lw in range(Lw):
                    w = lw * sw + kw - pw
                    if w < 0 or w >= W:
                        continue
                    F[q, lh * Lw + lw, h * W + w] = 1.0
    return F, Lh, Lw


def softcomp_forward(x, t, emb_weight, emb_bias, out_bias,
                     *, channel, output_size, kernel_size, stride, padding):
    """x: (b, n, hidden); emb_weight: (C*KH*KW, hidden); out_bias: (C, H, W)."""
    b, n, hidden = x.shape
    H, W = output_size
    KH, KW = kernel_size
    Q = KH * KW
    C = channel
    HW = H * W
    bt = b * t
    L = n // t
    assert L * t == n
    assert emb_weight.shape == (C * Q, hidden)

    Fmat, Lh, Lw = _fold_matrix(output_size, kernel_size, stride, padding)
    assert Lh * Lw == L, (Lh, Lw, L)

    # (b, n, hidden) -> (b*t, L, hidden): same token split as .view(b*t, -1, c).
    x_frames = jnp.reshape(x, (bt, L, hidden)).astype(jnp.bfloat16)

    # Embedding-weight rows reordered from (channel, tap) to (tap, channel).
    w_perm = (jnp.asarray(emb_weight, jnp.float32)
              .reshape(C, Q, hidden).transpose(1, 0, 2).reshape(Q * C, hidden)
              .astype(jnp.bfloat16))

    # Fold is linear, so Fold(embedding bias) is a constant (C, HW) map; add the
    # learned output bias too -> one final add inside the kernel.
    cover = jnp.asarray(Fmat.sum(axis=1), jnp.float32)                 # (Q, HW)
    folded_emb_bias = jnp.asarray(emb_bias, jnp.float32).reshape(C, Q) @ cover
    total_bias = folded_emb_bias + jnp.asarray(out_bias, jnp.float32).reshape(C, HW)

    f_bf16 = jnp.asarray(Fmat, jnp.bfloat16)               # 0/1 values: exact in bf16

    kernel = functools.partial(_softcomp_kernel, C=C, Q=Q)
    out_flat = pl.pallas_call(
        kernel,
        grid=(bt,),
        in_specs=[
            pl.BlockSpec((1, L, hidden), lambda f: (f, 0, 0)),
            pl.BlockSpec((Q * C, hidden), lambda f: (0, 0)),
            pl.BlockSpec((Q, L, HW), lambda f: (0, 0, 0)),
            pl.BlockSpec((C, HW), lambda f: (0, 0)),
        ],
        out_specs=pl.BlockSpec((1, C, HW), lambda f: (f, 0, 0)),
        out_shape=jax.ShapeDtypeStruct((bt, C, HW), jnp.float32),
        compiler_params=pltpu.CompilerParams(dimension_semantics=("parallel",)),
    )(x_frames, w_perm, f_bf16, total_bias)

    return jnp.reshape(out_flat, (bt, C, H, W))


# ---------------------------------------------------------------------------
# Pure numpy reference (explicit scatter-add Fold) for checking.
# ---------------------------------------------------------------------------
def _ref_forward(x, t, emb_w, emb_b, out_bias, channel, output_size,
                 kernel_size, stride, padding):
    x = np.asarray(x, np.float64)
    We = np.asarray(emb_w, np.float64)
    be = np.asarray(emb_b, np.float64)
    b, n, _ = x.shape
    H, W = output_size
    KH, KW = kernel_size
    sh, sw = stride
    ph, pw = padding
    C = channel
    feat = x @ We.T + be                       # (b, n, c_out)
    bt = b * t
    L = n // t
    feat = feat.reshape(bt, L, C, KH, KW)      # Fold channel ordering is (c, kh, kw)
    Lh = (H + 2 * ph - KH) // sh + 1
    Lw = (W + 2 * pw - KW) // sw + 1
    out = np.zeros((bt, C, H, W), np.float64)
    for lh in range(Lh):
        for kh in range(KH):
            h = lh * sh + kh - ph
            if h < 0 or h >= H:
                continue
            for lw in range(Lw):
                for kw in range(KW):
                    w = lw * sw + kw - pw
                    if w < 0 or w >= W:
                        continue
                    out[:, :, h, w] += feat[:, lh * Lw + lw, :, kh, kw]
    out += np.asarray(out_bias, np.float64)[None]
    return out


if __name__ == "__main__":
    # SoftComp(channel=4, hidden=32, output_size=(16,16), kernel=(3,3),
    #          stride=(2,2), padding=(1,1)); batch=2, t=2 frames.
    B, T = 2, 2
    CHANNEL, HIDDEN = 4, 32
    OUTPUT_SIZE = (16, 16)
    KERNEL_SIZE = (3, 3)
    STRIDE = (2, 2)
    PADDING = (1, 1)

    KH, KW = KERNEL_SIZE
    C_OUT = CHANNEL * KH * KW
    LH = (OUTPUT_SIZE[0] + 2 * PADDING[0] - KH) // STRIDE[0] + 1
    LW = (OUTPUT_SIZE[1] + 2 * PADDING[1] - KW) // STRIDE[1] + 1
    N = T * LH * LW                            # tokens per batch element (= t * L)

    key = jax.random.PRNGKey(0)
    kx, kwgt, kb, ko = jax.random.split(key, 4)
    x = jax.random.normal(kx, (B, N, HIDDEN), jnp.float32)
    bound = 1.0 / np.sqrt(HIDDEN)              # nn.Linear-style uniform init
    emb_w = jax.random.uniform(kwgt, (C_OUT, HIDDEN), jnp.float32, -bound, bound)
    emb_b = jax.random.uniform(kb, (C_OUT,), jnp.float32, -bound, bound)
    out_b = 0.1 * jax.random.normal(ko, (CHANNEL,) + OUTPUT_SIZE, jnp.float32)

    out = softcomp_forward(x, T, emb_w, emb_b, out_b,
                           channel=CHANNEL, output_size=OUTPUT_SIZE,
                           kernel_size=KERNEL_SIZE, stride=STRIDE, padding=PADDING)
    out = jax.block_until_ready(out)

    ref = _ref_forward(np.asarray(x), T, np.asarray(emb_w), np.asarray(emb_b),
                       np.asarray(out_b), CHANNEL, OUTPUT_SIZE, KERNEL_SIZE,
                       STRIDE, PADDING)
    assert out.shape == ref.shape, (out.shape, ref.shape)
    # bf16 MXU operands with f32 accumulation -> ~1e-2 absolute error budget.
    np.testing.assert_allclose(np.asarray(out, np.float64), ref, atol=2e-2, rtol=2e-2)

    print("KERNEL_OK")
</pallas_src>

<mosaic_0001>
module attributes {stable_mosaic.version = 11 : i64} {
  func.func @_softcomp_kernel(%arg0: i32, %arg1: memref<1x64x32xbf16, #tpu.memory_space<vmem>>, %arg2: memref<36x32xbf16, #tpu.memory_space<vmem>>, %arg3: memref<9x64x256xbf16, #tpu.memory_space<vmem>>, %arg4: memref<4x256xf32, #tpu.memory_space<vmem>>, %arg5: memref<1x4x256xf32, #tpu.memory_space<vmem>>) attributes {dimension_semantics = [#tpu.dimension_semantics<parallel>], iteration_bounds = array<i64: 4>, scalar_prefetch = 0 : i64, scratch_operands = 0 : i64, tpu.core_type = #tpu.core_type<tc>, window_params = [{transform_indices = @transform_0, window_bounds = array<i64: 1, 64, 32>}, {pipeline_mode = #tpu.pipeline_mode<synchronous>, transform_indices = @transform_1, window_bounds = array<i64: 36, 32>}, {pipeline_mode = #tpu.pipeline_mode<synchronous>, transform_indices = @transform_2, window_bounds = array<i64: 9, 64, 256>}, {pipeline_mode = #tpu.pipeline_mode<synchronous>, transform_indices = @transform_3, window_bounds = array<i64: 4, 256>}, {transform_indices = @transform_4, window_bounds = array<i64: 1, 4, 256>}]} {
    %c0 = arith.constant 0 : index
    %c0_0 = arith.constant 0 : index
    %c0_1 = arith.constant 0 : index
    %0 = vector.load %arg1[%c0, %c0_0, %c0_1] : memref<1x64x32xbf16, #tpu.memory_space<vmem>>, vector<1x64x32xbf16>
    %1 = vector.shape_cast %0 : vector<1x64x32xbf16> to vector<64x32xbf16>
    %c0_2 = arith.constant 0 : index
    %c0_3 = arith.constant 0 : index
    %2 = vector.load %arg2[%c0_2, %c0_3] : memref<36x32xbf16, #tpu.memory_space<vmem>>, vector<36x32xbf16>
    %c0_4 = arith.constant 0 : index
    %c0_5 = arith.constant 0 : index
    %3 = vector.load %arg4[%c0_4, %c0_5] : memref<4x256xf32, #tpu.memory_space<vmem>>, vector<4x256xf32>
    %cst = arith.constant dense<0.000000e+00> : vector<36x64xf32>
    %4 = tpu.matmul %2, %1, %cst {dimension_numbers = #tpu.dot_dimension_numbers<[1], [1], [0], [0], [0, 0, 1, 0], [], []>} : vector<36x32xbf16>, vector<64x32xbf16>, vector<36x64xf32> -> vector<36x64xf32>
    %5 = arith.truncf %4 : vector<36x64xf32> to vector<36x64xbf16>
    %6 = vector.extract_strided_slice %5 {offsets = [0, 0], sizes = [4, 64], strides = [1, 1]} : vector<36x64xbf16> to vector<4x64xbf16>
    %c0_6 = arith.constant 0 : index
    %c0_7 = arith.constant 0 : index
    %c0_8 = arith.constant 0 : index
    %7 = vector.load %arg3[%c0_6, %c0_7, %c0_8] : memref<9x64x256xbf16, #tpu.memory_space<vmem>>, vector<1x64x256xbf16>
    %8 = vector.shape_cast %7 : vector<1x64x256xbf16> to vector<64x256xbf16>
    %cst_9 = arith.constant dense<0.000000e+00> : vector<4x256xf32>
    %9 = tpu.matmul %6, %8, %cst_9 {dimension_numbers = #tpu.dot_dimension_numbers<[1], [0], [0], [1], [0, 0, 1, 1], [], []>} : vector<4x64xbf16>, vector<64x256xbf16>, vector<4x256xf32> -> vector<4x256xf32>
    %10 = arith.addf %3, %9 : vector<4x256xf32>
    %11 = vector.extract_strided_slice %5 {offsets = [4, 0], sizes = [4, 64], strides = [1, 1]} : vector<36x64xbf16> to vector<4x64xbf16>
    %c1 = arith.constant 1 : index
    %c0_10 = arith.constant 0 : index
    %c0_11 = arith.constant 0 : index
    %12 = vector.load %arg3[%c1, %c0_10, %c0_11] : memref<9x64x256xbf16, #tpu.memory_space<vmem>>, vector<1x64x256xbf16>
    %13 = vector.shape_cast %12 : vector<1x64x256xbf16> to vector<64x256xbf16>
    %cst_12 = arith.constant dense<0.000000e+00> : vector<4x256xf32>
    %14 = tpu.matmul %11, %13, %cst_12 {dimension_numbers = #tpu.dot_dimension_numbers<[1], [0], [0], [1], [0, 0, 1, 1], [], []>} : vector<4x64xbf16>, vector<64x256xbf16>, vector<4x256xf32> -> vector<4x256xf32>
    %15 = arith.addf %10, %14 : vector<4x256xf32>
    %16 = vector.extract_strided_slice %5 {offsets = [8, 0], sizes = [4, 64], strides = [1, 1]} : vector<36x64xbf16> to vector<4x64xbf16>
    %c2 = arith.constant 2 : index
    %c0_13 = arith.constant 0 : index
    %c0_14 = arith.constant 0 : index
    %17 = vector.load %arg3[%c2, %c0_13, %c0_14] : memref<9x64x256xbf16, #tpu.memory_space<vmem>>, vector<1x64x256xbf16>
    %18 = vector.shape_cast %17 : vector<1x64x256xbf16> to vector<64x256xbf16>
    %cst_15 = arith.constant dense<0.000000e+00> : vector<4x256xf32>
    %19 = tpu.matmul %16, %18, %cst_15 {dimension_numbers = #tpu.dot_dimension_numbers<[1], [0], [0], [1], [0, 0, 1, 1], [], []>} : vector<4x64xbf16>, vector<64x256xbf16>, vector<4x256xf32> -> vector<4x256xf32>
    %20 = arith.addf %15, %19 : vector<4x256xf32>
    %21 = vector.extract_strided_slice %5 {offsets = [12, 0], sizes = [4, 64], strides = [1, 1]} : vector<36x64xbf16> to vector<4x64xbf16>
    %c3 = arith.constant 3 : index
    %c0_16 = arith.constant 0 : index
    %c0_17 = arith.constant 0 : index
    %22 = vector.load %arg3[%c3, %c0_16, %c0_17] : memref<9x64x256xbf16, #tpu.memory_space<vmem>>, vector<1x64x256xbf16>
    %23 = vector.shape_cast %22 : vector<1x64x256xbf16> to vector<64x256xbf16>
    %cst_18 = arith.constant dense<0.000000e+00> : vector<4x256xf32>
    %24 = tpu.matmul %21, %23, %cst_18 {dimension_numbers = #tpu.dot_dimension_numbers<[1], [0], [0], [1], [0, 0, 1, 1], [], []>} : vector<4x64xbf16>, vector<64x256xbf16>, vector<4x256xf32> -> vector<4x256xf32>
    %25 = arith.addf %20, %24 : vector<4x256xf32>
    %26 = vector.extract_strided_slice %5 {offsets = [16, 0], sizes = [4, 64], strides = [1, 1]} : vector<36x64xbf16> to vector<4x64xbf16>
    %c4 = arith.constant 4 : index
    %c0_19 = arith.constant 0 : index
    %c0_20 = arith.constant 0 : index
    %27 = vector.load %arg3[%c4, %c0_19, %c0_20] : memref<9x64x256xbf16, #tpu.memory_space<vmem>>, vector<1x64x256xbf16>
    %28 = vector.shape_cast %27 : vector<1x64x256xbf16> to vector<64x256xbf16>
    %cst_21 = arith.constant dense<0.000000e+00> : vector<4x256xf32>
    %29 = tpu.matmul %26, %28, %cst_21 {dimension_numbers = #tpu.dot_dimension_numbers<[1], [0], [0], [1], [0, 0, 1, 1], [], []>} : vector<4x64xbf16>, vector<64x256xbf16>, vector<4x256xf32> -> vector<4x256xf32>
    %30 = arith.addf %25, %29 : vector<4x256xf32>
    %31 = vector.extract_strided_slice %5 {offsets = [20, 0], sizes = [4, 64], strides = [1, 1]} : vector<36x64xbf16> to vector<4x64xbf16>
    %c5 = arith.constant 5 : index
    %c0_22 = arith.constant 0 : index
    %c0_23 = arith.constant 0 : index
    %32 = vector.load %arg3[%c5, %c0_22, %c0_23] : memref<9x64x256xbf16, #tpu.memory_space<vmem>>, vector<1x64x256xbf16>
    %33 = vector.shape_cast %32 : vector<1x64x256xbf16> to vector<64x256xbf16>
    %cst_24 = arith.constant dense<0.000000e+00> : vector<4x256xf32>
    %34 = tpu.matmul %31, %33, %cst_24 {dimension_numbers = #tpu.dot_dimension_numbers<[1], [0], [0], [1], [0, 0, 1, 1], [], []>} : vector<4x64xbf16>, vector<64x256xbf16>, vector<4x256xf32> -> vector<4x256xf32>
    %35 = arith.addf %30, %34 : vector<4x256xf32>
    %36 = vector.extract_strided_slice %5 {offsets = [24, 0], sizes = [4, 64], strides = [1, 1]} : vector<36x64xbf16> to vector<4x64xbf16>
    %c6 = arith.constant 6 : index
    %c0_25 = arith.constant 0 : index
    %c0_26 = arith.constant 0 : index
    %37 = vector.load %arg3[%c6, %c0_25, %c0_26] : memref<9x64x256xbf16, #tpu.memory_space<vmem>>, vector<1x64x256xbf16>
    %38 = vector.shape_cast %37 : vector<1x64x256xbf16> to vector<64x256xbf16>
    %cst_27 = arith.constant dense<0.000000e+00> : vector<4x256xf32>
    %39 = tpu.matmul %36, %38, %cst_27 {dimension_numbers = #tpu.dot_dimension_numbers<[1], [0], [0], [1], [0, 0, 1, 1], [], []>} : vector<4x64xbf16>, vector<64x256xbf16>, vector<4x256xf32> -> vector<4x256xf32>
    %40 = arith.addf %35, %39 : vector<4x256xf32>
    %41 = vector.extract_strided_slice %5 {offsets = [28, 0], sizes = [4, 64], strides = [1, 1]} : vector<36x64xbf16> to vector<4x64xbf16>
    %c7 = arith.constant 7 : index
    %c0_28 = arith.constant 0 : index
    %c0_29 = arith.constant 0 : index
    %42 = vector.load %arg3[%c7, %c0_28, %c0_29] : memref<9x64x256xbf16, #tpu.memory_space<vmem>>, vector<1x64x256xbf16>
    %43 = vector.shape_cast %42 : vector<1x64x256xbf16> to vector<64x256xbf16>
    %cst_30 = arith.constant dense<0.000000e+00> : vector<4x256xf32>
    %44 = tpu.matmul %41, %43, %cst_30 {dimension_numbers = #tpu.dot_dimension_numbers<[1], [0], [0], [1], [0, 0, 1, 1], [], []>} : vector<4x64xbf16>, vector<64x256xbf16>, vector<4x256xf32> -> vector<4x256xf32>
    %45 = arith.addf %40, %44 : vector<4x256xf32>
    %46 = vector.extract_strided_slice %5 {offsets = [32, 0], sizes = [4, 64], strides = [1, 1]} : vector<36x64xbf16> to vector<4x64xbf16>
    %c8 = arith.constant 8 : index
    %c0_31 = arith.constant 0 : index
    %c0_32 = arith.constant 0 : index
    %47 = vector.load %arg3[%c8, %c0_31, %c0_32] : memref<9x64x256xbf16, #tpu.memory_space<vmem>>, vector<1x64x256xbf16>
    %48 = vector.shape_cast %47 : vector<1x64x256xbf16> to vector<64x256xbf16>
    %cst_33 = arith.constant dense<0.000000e+00> : vector<4x256xf32>
    %49 = tpu.matmul %46, %48, %cst_33 {dimension_numbers = #tpu.dot_dimension_numbers<[1], [0], [0], [1], [0, 0, 1, 1], [], []>} : vector<4x64xbf16>, vector<64x256xbf16>, vector<4x256xf32> -> vector<4x256xf32>
    %50 = arith.addf %45, %49 : vector<4x256xf32>
    %c0_34 = arith.constant 0 : index
    %c0_35 = arith.constant 0 : index
    %c0_36 = arith.constant 0 : index
    %51 = vector.load %arg5[%c0_34, %c0_35, %c0_36] : memref<1x4x256xf32, #tpu.memory_space<vmem>>, vector<1x4x256xf32>
    %52 = vector.shape_cast %51 : vector<1x4x256xf32> to vector<4x256xf32>
    %53 = vector.shape_cast %50 : vector<4x256xf32> to vector<1x4x256xf32>
    tpu.vector_store %arg5[%c0_34, %c0_35, %c0_36], %53 {strides = array<i32>} : memref<1x4x256xf32, #tpu.memory_space<vmem>>, vector<1x4x256xf32>,
    return
  }
  func.func @transform_0(%arg0: i32) -> (i32, i32, i32) {
    %c0_i32 = arith.constant 0 : i32
    %c0_i32_0 = arith.constant 0 : i32
    %c0_i32_1 = arith.constant 0 : i32
    return %arg0, %c0_i32, %c0_i32_0 : i32, i32, i32
  }
  func.func @transform_1(%arg0: i32) -> (i32, i32) {
    %c0_i32 = arith.constant 0 : i32
    %c0_i32_0 = arith.constant 0 : i32
    %c0_i32_1 = arith.constant 0 : i32
    return %c0_i32, %c0_i32_0 : i32, i32
  }
  func.func @transform_2(%arg0: i32) -> (i32, i32, i32) {
    %c0_i32 = arith.constant 0 : i32
    %c0_i32_0 = arith.constant 0 : i32
    %c0_i32_1 = arith.constant 0 : i32
    %c0_i32_2 = arith.constant 0 : i32
    return %c0_i32, %c0_i32_0, %c0_i32_1 : i32, i32, i32
  }
  func.func @transform_3(%arg0: i32) -> (i32, i32) {
    %c0_i32 = arith.constant 0 : i32
    %c0_i32_0 = arith.constant 0 : i32
    %c0_i32_1 = arith.constant 0 : i32
    return %c0_i32, %c0_i32_0 : i32, i32
  }
  func.func @transform_4(%arg0: i32) -> (i32, i32, i32) {
    %c0_i32 = arith.constant 0 : i32
    %c0_i32_0 = arith.constant 0 : i32
    %c0_i32_1 = arith.constant 0 : i32
    return %arg0, %c0_i32, %c0_i32_0 : i32, i32, i32
  }
}

</mosaic_0001>

<bundles_post_ra>
// kernel: tpu_custom_call.1
= control target key start
LH: loop header
LB: loop body
LE: loop exit
PB: predicated region body
PF: predicated region fallthrough
CT: control target
= control target key end

     0   :  { %9 = vsyncpa [#allocation3], 0  ;;  %s1940_s0 = inlined_call_operand.vmem [shape: bf16[4,64,32], index: 0, kind: input, shape index: {}]   ;;  %s1941_s1 = inlined_call_operand.vmem [shape: bf16[36,32], index: 1, kind: input, shape index: {}]   ;;  %s1942_s2 = inlined_call_operand.hbm [shape: bf16[9,64,256], index: 2, kind: input, shape index: {}]   ;;  %s1943_s3 = inlined_call_operand.vmem [shape: f32[4,256], index: 3, kind: input, shape index: {}]   ;;  %s1944_s4 = inlined_call_operand.hbm [shape: f32[4,4,256], index: 4, kind: output, shape index: {}]  }
   0x1   :  { %10 = vsyncpa [#allocation4], 0 }
   0x2   :  { %12 = vsyncpa [#allocation4 + $0x1], 0  ;;  %s1749_s15 = smov 0   ;;  %s1751_s16 = smov 0  }
   0x3   :  { %s1753_s17 = smov 0   ;;  %s1755_s18 = smov 0  }
   0x4 LB: > { %s1770_s19 = sadd.s32 4294967295, %s1715_s18   ;;  %s1317_s20 = sadd.s32 4294967294, %s1715_s18   ;;  %s1715_s18 = sphi %s1755_s18, %s1960_s18   ;;  %s1711_s17 = sphi %s1753_s17, %s1959_s17   ;;  %s1707_s16 = sphi %s1751_s16, %s1958_s16   ;;  %s1703_s15 = sphi %s1749_s15, %s1957_s15  }
   0x5   : > { %s1774_s21 = sadd.s32 1, %s1715_s18   ;;  %s114_s22 = sadd.s32 1, %s1711_s17 }
   0x6   : > { %s111_s23 = ssub.s32 %s1715_s18, %s1774_s21  ;;  %p124_p0 = scmp.ne.s32.totalorder %s1711_s17, %s1707_s16 }
   0x7   : > { %p112_p1 = scmp.eq.s32.totalorder %s111_s23, 0  ;;  %p125_p2 = scmp.eq.s32.totalorder %s1770_s19, 3 }
   0x8   : > { %p130_p3 = scmp.ne.s32.totalorder %s1707_s16, %s1703_s15  ;;  %p131_p4 = scmp.eq.s32.totalorder %s1317_s20, 3 }
   0x9   : > { %s1785_s24 = scalar_select %p112_p1, %s1711_s17, %s114_s22  }
   0xa   : > { %p1787_p5 = por %p125_p2, %p124_p0  ;;  %p1791_p6 = por %p131_p4, %p130_p3 }
   0xb   : > { %p1318_p7 = scmp.ge.s32.totalorder %s1715_s18, 1  ;;  %p138_p8 = scmp.lt.s32.totalorder %s1715_s18, 5 }
   0xc   : > { %s1948_s25 = scalar_select %p1787_p5, 1, 0 }
   0xd   : > { %s1949_s26 = scalar_select %p1791_p6, 1, 0 }
   0xe   : > { %p1945_p9 = scmp.eq.s32.totalorder %s1770_s19, 0  ;;  %p1798_p10 = pnand %p1318_p7, %p138_p8 }
   0xf   : > { %s1717_s28 = smov [#allocation2]   ;;  %s1621_s7 = scalar_lea.hbm %s1942_s2, 9216 }
  0x10   : > { %s1950_s27 = scalar_select %p1798_p10, 1, 0 }
  0x11   : > { %s153_s29 = sshll.u32 %s1717_s28, 4  ;;  %p1457_p11 = pneg %p1798_p10  ;;  %s154_s29 = int_to_ptr.vmem [resolvable:$true] %s153_s29 }
  0x12   : > { %p1622_p13 = scmp.ne.s32.totalorder %s1942_s2, %s1621_s7  ;;  %p1628_p3 = scmp.lt.u32.totalorder %s1621_s7, %s1942_s2 }
  0x13   : > { %p1806_p12 = pnand %p1945_p9, %p1457_p11 }
  0x15   : > { %p1623_p0 = pneg %p1806_p12 }
  0x17   : > { %p1624_p1 = pnand %p1623_p0, %p1622_p13 }
  0x19   : > { %p1625_p2 = pneg %p1624_p1 }
  0x1b   : > { %p1630_p4 = pnand %p1628_p3, %p1625_p2 }
  0x1d   : > { %1633 = shalt.err (!%p1630_p4)
}
  0x1e   : > { %s1634_s12 = scalar_lea.vmem %s154_s29, 9216  ;;  %p1642_p9 = scmp.lt.s32.totalorder %s154_s29, %s154_s29 }
  0x1f   : > { %p1635_p7 = scmp.ne.s32.totalorder %s154_s29, %s1634_s12  ;;  %p1643_p6 = scmp.lt.s32.totalorder %s1634_s12, %s1634_s12 }
  0x21   : > { %p1637_p8 = pnand %p1635_p7, %p1623_p0  ;;  %p1644_p5 = por %p1643_p6, %p1642_p9 }
  0x23   : > { %p1638_p11 = pneg %p1637_p8 }
  0x25   : > { %p1645_p10 = pnand %p1644_p5, %p1638_p11 }
  0x27   : > { %1648 = shalt.err (!%p1645_p10)
}
  0x28   : > { %s1718_s13 = smov 128   ;;  %s1719_s14 = smov 8  }
  0x29   : > { %1460 = dma.hbm_to_vmem [thread:$0]  (!%p1806_p12), %s1942_s2, 9216, %s154_s29, [#allocation3], %s1718_s13, %s1718_s13, %s1719_s14  }
  0x2a   : > { %p1952_p13 = scmp.ne.s32.totalorder %s1950_s27, 0 }
  0x2b   : > { %p1953_p1 = scmp.eq.s32.totalorder (!%p1952_p13), %s1770_s19, 0 }
  0x2c   : > { %180 = sbr.rel (%p1952_p13) target bundleno = 618 (0x26a), region = 36 }
  0x33   : > { %1694 = dma.done.wait (%p1953_p1), [#allocation3], 9216   ;;  %p1954_p0 = pmov %p1953_p1 }
  0x34   : > { %p206_p5 = scmp.lt.s32.totalorder %s1770_s19, 3  ;;  %v1720_v0 = vmov 0.0   ;;  %vm1721_vm0 = vmmov 0   ;;  %vm259_vm1 = vcmask 261120   ;;  %v1513_v4 = vld [vmem:[#allocation2 + $0x4] ss:$8 sps:$4 sm:$0xff]  }
  0x35   : > { %1696 = vsyncadd (%p1954_p0), [#allocation3], 4294958080  ;;  %1431 = vmatprep.subr.bf16.mxu0 %v1720_v0  ;;  %1439 = vmatprep.mubr.msk.bf16.mxu0 %vm1721_vm0, %v1720_v0  ;;  %v1515_v5 = vld [vmem:[#allocation2] ss:$8 sps:$4 sm:$0xff]   ;;  %v1519_v7 = vld [vmem:[#allocation2 + $0x14] ss:$8 sps:$4 sm:$0xff]  }
  0x36   : > { %s207_s23 = scalar_select %p206_p5, %s1770_s19, 3  ;;  %392 = vmatprep.subr.bf16.mxu1 %v1513_v4  ;;  %v1521_v8 = vld [vmem:[#allocation2 + $0x10] ss:$8 sps:$4 sm:$0xff]   ;;  %v1525_v10 = vld [vmem:[#allocation2 + $0x24] ss:$8 sps:$4 sm:$0xff]   ;;  %v1722_v29 = vmov 0  }
  0x37   : > { %393 = vmatpush1.bf16.msra.mxu1 %v1515_v5  ;;  %v1527_v11 = vld [vmem:[#allocation2 + $0x20] ss:$8 sps:$4 sm:$0xff]   ;;  %v1518_v14 = vld [vmem:[#allocation2 + $0xc4] ss:$8 sps:$4 sm:$0xff]   ;;  %v1524_v18 = vld [vmem:[#allocation2 + $0xd4] ss:$8 sps:$4 sm:$0xff]   ;;  %424 = vmatprep.mubr.bf16.mxu1 %v1722_v29 }
  0x38   : > { %s1422_s28 = sshll.u32 %s207_s23, 5  ;;  %394 = vmatprep.subr.bf16.mxu1 %v1519_v7  ;;  %v1510_v16 = vld [vmem:[%s1941_s1] sm:$0xff]   ;;  %v1522_v19 = vld [vmem:[#allocation2 + $0xd0] ss:$8 sps:$4 sm:$0xff]   ;;  %v1511_v21 = vld [vmem:[%s1941_s1 + $0x8] sm:$0xff]   ;;  %vm388_vm2 = vcmask 523264  }
  0x39   : > { %s210_s27 = scalar_lea.vmem %s1940_s0, %s1422_s28  ;;  %v1516_v17 = vld [vmem:[#allocation2 + $0xc0] ss:$8 sps:$4 sm:$0xff]   ;;  %v1530_v20 = vld [vmem:[#allocation2 + $0xe4] ss:$8 sps:$4 sm:$0xff]   ;;  %v1531_v24 = vld [vmem:[#allocation2 + $0x34] ss:$8 sps:$4 sm:$0xff]  }
  0x3a   : > { %v1506_v1 = vld [vmem:[%s210_s27] sm:$0xff]   ;;  %v1507_v3 = vld [vmem:[%s210_s27 + $0x8] sm:$0xff]   ;;  %v1508_v9 = vld [vmem:[%s210_s27 + $0x10] sm:$0xff]   ;;  %s203_s13 = sand.u32 1, %s1707_s16   ;;  %s1423_s20 = sshll.u32 %s1770_s19, 7 }
  0x3b   : > { %v270_v2 = vsel %vm259_vm1, %v1506_v1, 0  ;;  %v273_v6 = vsel %vm259_vm1, %v1507_v3, 0  ;;  %395 = vmatpush1.bf16.msra.mxu1 %v1521_v8  ;;  %v276_v12 = vsel %vm259_vm1, %v1508_v9, 0  ;;  %v1509_v13 = vld [vmem:[%s210_s27 + $0x18] sm:$0xff]   ;;  %v1528_v22 = vld [vmem:[#allocation2 + $0xe0] ss:$8 sps:$4 sm:$0xff]   ;;  %s1898_s30 = scalar_lea.hbm %s1944_s4, %s1423_s20 }
  0x3c   : > { %1432 = vmatpush3.bf16.xpose.msra.mxu0 %v270_v2  ;;  %396 = vmatprep.subr.bf16.mxu1 %v1525_v10  ;;  %v279_v15 = vsel %vm259_vm1, %v1509_v13, 0  ;;  %v1512_v23 = vld [vmem:[%s1941_s1 + $0x10] ss:$0 sps:$4 sm:$0x33]   ;;  %v1536_v26 = vld [vmem:[#allocation2 + $0xf4] ss:$8 sps:$4 sm:$0xff]  }
  0x3d   : > { %1433 = vmatprep.subr.bf16.mxu0 %v1720_v0  ;;  %v1533_v25 = vld [vmem:[#allocation2 + $0x30] ss:$8 sps:$4 sm:$0xff]   ;;  %v1539_v28 = vld [vmem:[#allocation2 + $0x44] ss:$8 sps:$4 sm:$0xff]   ;;  %v1537_v34 = vld [vmem:[#allocation2 + $0x40] ss:$8 sps:$4 sm:$0xff]  }
  0x3e   : > { %v1534_v27 = vld [vmem:[#allocation2 + $0xf0] ss:$8 sps:$4 sm:$0xff]   ;;  %v1551_v30 = vld [vmem:[#allocation2 + $0x144] ss:$8 sps:$4 sm:$0xff]   ;;  %v1542_v37 = vld [vmem:[#allocation2 + $0x54] ss:$8 sps:$4 sm:$0xff]  }
  0x3f   : > { %397 = vmatpush1.bf16.msra.mxu1 %v1527_v11  ;;  %v1549_v38 = vld [vmem:[#allocation2 + $0x140] ss:$8 sps:$4 sm:$0xff]   ;;  %v1557_v40 = vld [vmem:[#allocation2 + $0x154] ss:$8 sps:$4 sm:$0xff]   ;;  %v1540_v41 = vld [vmem:[#allocation2 + $0x50] ss:$8 sps:$4 sm:$0xff]  }
  0x40   : > { %398 = vmatprep.subr.bf16.mxu1 %v1531_v24  ;;  %v1545_v42 = vld [vmem:[#allocation2 + $0x64] ss:$8 sps:$4 sm:$0xff]   ;;  %v1555_v43 = vld [vmem:[#allocation2 + $0x150] ss:$8 sps:$4 sm:$0xff]   ;;  %v1543_v47 = vld [vmem:[#allocation2 + $0x60] ss:$8 sps:$4 sm:$0xff]  }
  0x41   : > { %v1563_v45 = vld [vmem:[#allocation2 + $0x164] ss:$8 sps:$4 sm:$0xff]   ;;  %v1548_v49 = vld [vmem:[#allocation2 + $0x74] ss:$8 sps:$4 sm:$0xff]   ;;  %v1561_v52 = vld [vmem:[#allocation2 + $0x160] ss:$8 sps:$4 sm:$0xff]  }
  0x42   : > { %v1569_v53 = vld [vmem:[#allocation2 + $0x174] ss:$8 sps:$4 sm:$0xff]   ;;  %v1546_v54 = vld [vmem:[#allocation2 + $0x70] ss:$8 sps:$4 sm:$0xff]   ;;  %v1554_v55 = vld [vmem:[#allocation2 + $0x84] ss:$8 sps:$4 sm:$0xff]  }
  0x43   : > { %399 = vmatpush1.bf16.msra.mxu1 %v1533_v25  ;;  %v1567_v56 = vld [vmem:[#allocation2 + $0x170] ss:$8 sps:$4 sm:$0xff]   ;;  %v1575_v58 = vld [vmem:[#allocation2 + $0x1c4] ss:$8 sps:$4 sm:$0xff]   ;;  %v1552_v60 = vld [vmem:[#allocation2 + $0x80] ss:$8 sps:$4 sm:$0xff]  }
  0x44   : > { %1434 = vmatpush3.bf16.xpose.msra.mxu0 %v273_v6  ;;  %492 = vmatprep.subr.bf16.mxu1 %v1539_v28  ;;  %v1560_v63 = vld [vmem:[#allocation2 + $0x94] ss:$8 sps:$4 sm:$0xff]   ;;  %v1573_v2 = vld [vmem:[#allocation2 + $0x1c0] ss:$8 sps:$4 sm:$0xff]   ;;  %v1558_v4 = vld [vmem:[#allocation2 + $0x90] ss:$8 sps:$4 sm:$0xff]  }
  0x45   : > { %1435 = vmatprep.subr.bf16.mxu0 %v1720_v0  ;;  %v1581_v3 = vld [vmem:[#allocation2 + $0x1d4] ss:$8 sps:$4 sm:$0xff]   ;;  %v1566_v5 = vld [vmem:[#allocation2 + $0xa4] ss:$8 sps:$4 sm:$0xff]   ;;  %v1579_v6 = vld [vmem:[#allocation2 + $0x1d0] ss:$8 sps:$4 sm:$0xff]  }
  0x46   : > { %v1587_v7 = vld [vmem:[#allocation2 + $0x1e4] ss:$8 sps:$4 sm:$0xff]   ;;  %v1564_v8 = vld [vmem:[#allocation2 + $0xa0] ss:$8 sps:$4 sm:$0xff]   ;;  %v1572_v9 = vld [vmem:[#allocation2 + $0xb4] ss:$8 sps:$4 sm:$0xff]  }
  0x47   : > { %v1585_v10 = vld [vmem:[#allocation2 + $0x1e0] ss:$8 sps:$4 sm:$0xff]   ;;  %v1593_v11 = vld [vmem:[#allocation2 + $0x1f4] ss:$8 sps:$4 sm:$0xff]   ;;  %v1578_v13 = vld [vmem:[#allocation2 + $0x104] ss:$8 sps:$4 sm:$0xff]  }
  0x48   : > { %v1599_v24 = vld [vmem:[#allocation2 + $0x184] ss:$8 sps:$4 sm:$0xff]   ;;  %v1597_v25 = vld [vmem:[#allocation2 + $0x180] ss:$8 sps:$4 sm:$0xff]   ;;  %s1323_s14 = sshll.u32 %s203_s13, 3  ;;  %s1232_s27 = scalar_lea.sflag [#allocation4], %s203_s13 }
  0x49   : > { %v1605_v28 = vld [vmem:[#allocation2 + $0x1a4] ss:$8 sps:$4 sm:$0xff]   ;;  %s205_s22 = scalar_lea.vmem [#allocation5], %s1323_s14  ;;  %p1955_p9 = scmp.ne.s32.totalorder %s1948_s25, 0 }
  0x4a   : > { %s1246_s23 = sshll.u32 %s205_s22, 4  ;;  %s1723_s19 = smov [#allocation5]   ;;  %s1900_s23 = int_to_ptr.vmem [resolvable:$true] %s1246_s23 }
  0x4b   : > { %s1649_s5 = scalar_lea.vmem %s1900_s23, 128  ;;  %s1653_s6 = sshll.u32 %s1723_s19, 4  ;;  %s1654_s6 = int_to_ptr.vmem [resolvable:$false] %s1653_s6 }
  0x4c   : > { %1436 = vmatpush3.bf16.xpose.msra.mxu0 %v276_v12  ;;  %v1570_v12 = vld [vmem:[#allocation2 + $0xb0] ss:$8 sps:$4 sm:$0xff]   ;;  %p1650_p6 = scmp.ne.s32.totalorder %s1900_s23, %s1649_s5  ;;  %s1655_s7 = scalar_lea.vmem %s1654_s6, 256 }
  0x4d   : > { %1437 = vmatprep.subr.bf16.mxu0 %v1720_v0  ;;  %p1656_p2 = scmp.lt.s32.totalorder %s1900_s23, %s1654_s6  ;;  %p1657_p3 = scmp.lt.s32.totalorder %s1655_s7, %s1649_s5 }
  0x4e   : > { %p1651_p10 = pnand %p1650_p6, %p1955_p9 }
  0x4f   : > { %p1658_p4 = por %p1657_p3, %p1656_p2 }
  0x50   : > { %p1652_p12 = pneg %p1651_p10 }
  0x52   : > { %p1659_p7 = pnand %p1658_p4, %p1652_p12 }
  0x54   : > { %1438 = vmatpush3.bf16.xpose.msra.mxu0 %v279_v15  ;;  %v1576_v15 = vld [vmem:[#allocation2 + $0x100] ss:$8 sps:$4 sm:$0xff]  }
  0x55   : > { %690 = vmatprep.subr.bf16.mxu0 %v1518_v14  ;;  %v1591_v14 = vld [vmem:[#allocation2 + $0x1f0] ss:$8 sps:$4 sm:$0xff]  }
  0x5b   : > { %1440 = vmatmul.mubr.msk.bf16.vlgmr.msra.gmra.mrb[0].mxu0 %vm259_vm1, %v1510_v16 }
  0x5c   : > { %1443 = vmatprep.mubr.msk.bf16.mxu0 %vm1721_vm0, %v1720_v0  ;;  %691 = vmatpush1.bf16.msra.mxu0 %v1516_v17 }
  0x5d   : > { %692 = vmatprep.subr.bf16.mxu0 %v1524_v18  ;;  %v1584_v18 = vld [vmem:[#allocation2 + $0x114] ss:$8 sps:$4 sm:$0xff]  }
  0x60   : > { %693 = vmatpush1.bf16.msra.mxu0 %v1522_v19  ;;  %v1582_v19 = vld [vmem:[#allocation2 + $0x110] ss:$8 sps:$4 sm:$0xff]  }
  0x61   : > { %694 = vmatprep.subr.bf16.mxu0 %v1530_v20  ;;  %v1590_v20 = vld [vmem:[#allocation2 + $0x124] ss:$8 sps:$4 sm:$0xff]  }
  0x63   : > { %1444 = vmatmul.mubr.msk.bf16.gmra.mrb[4].mxu0 %vm259_vm1, %v1511_v21  ;;  %v1588_v21 = vld [vmem:[#allocation2 + $0x120] ss:$8 sps:$4 sm:$0xff]  }
  0x64   : > { %1447 = vmatprep.mubr.msk.bf16.mxu0 %vm1721_vm0, %v1720_v0  ;;  %695 = vmatpush1.bf16.msra.mxu0 %v1528_v22  ;;  %v1596_v22 = vld [vmem:[#allocation2 + $0x134] ss:$8 sps:$4 sm:$0xff]  }
  0x65   : > { %696 = vmatprep.subr.bf16.mxu0 %v1536_v26  ;;  %v1602_v26 = vld [vmem:[#allocation2 + $0x194] ss:$8 sps:$4 sm:$0xff]  }
  0x68   : > { %697 = vmatpush1.bf16.msra.mxu0 %v1534_v27  ;;  %v1600_v27 = vld [vmem:[#allocation2 + $0x190] ss:$8 sps:$4 sm:$0xff]  }
  0x69   : > { %888 = vmatprep.subr.bf16.mxu0 %v1551_v30  ;;  %v1603_v30 = vld [vmem:[#allocation2 + $0x1a0] ss:$8 sps:$4 sm:$0xff]  }
  0x6b   : > { %1448 = vmatmul.mubr.msk.bf16.gmra.mrb[8].mxu0 %vm259_vm1, %v1512_v23  ;;  %v1594_v23 = vld [vmem:[#allocation2 + $0x130] ss:$8 sps:$4 sm:$0xff]  }
  0x6c   : > { %722 = vmatprep.mubr.bf16.mxu0 %v1722_v29 }
 0x12e   : > { %v315_v31 = vpop.f32.mrb[0].mxu0 }
 0x12f   : > { %v1441_v32 = vpop.f32.mrb[1].mxu0 }
 0x130   : > { %v318_v33 = vpop.f32.mrb[2].mxu0  ;;  %v1606_v32 = vld [vmem:[#allocation2 + $0x1b0] ss:$8 sps:$4 sm:$0xff]  }
 0x131   : > { %v1858_v35 = vpack.c.bf16 %v318_v33, %v315_v31  ;;  %v1442_v36 = vpop.f32.mrb[3].mxu0  ;;  %v1608_v31 = vld [vmem:[#allocation2 + $0x1b4] ss:$8 sps:$4 sm:$0xff]   ;;  %v1611_v33 = vld [vmem:[#allocation2 + $0x204] ss:$8 sps:$4 sm:$0xff]  }
 0x132   : > { %v1614_v36 = vld [vmem:[#allocation2 + $0x214] ss:$8 sps:$4 sm:$0xff]  }
 0x133   : > { %v646_v39 = vrot.slane %v1858_v35, 6  ;;  %1344 = vmatmul.mubr.msk.bf16.vlgmr.msra.gmra.mrb[0].mxu1 %vm388_vm2, %v1858_v35  ;;  %v448_v62 = vrot.slane %v1858_v35, 2  ;;  %v547_v16 = vrot.slane %v1858_v35, 4 }
 0x134   : > { %493 = vmatpush1.bf16.msra.mxu1 %v1537_v34  ;;  %524 = vmatprep.mubr.bf16.mxu1 %v1722_v29  ;;  %v1609_v34 = vld [vmem:[#allocation2 + $0x200] ss:$8 sps:$4 sm:$0xff]  }
 0x135   : > { %1371 = vmatmul.mubr.msk.bf16.vlgmr.msra.gmra.mrb[12].mxu0 %vm388_vm2, %v646_v39  ;;  %494 = vmatprep.subr.bf16.mxu1 %v1542_v37  ;;  %v1612_v37 = vld [vmem:[#allocation2 + $0x210] ss:$8 sps:$4 sm:$0xff]   ;;  %v1615_v39 = vld [vmem:[#allocation2 + $0x220] ss:$8 sps:$4 sm:$0xff]  }
 0x136   : > { %889 = vmatpush1.bf16.msra.mxu0 %v1549_v38  ;;  %v323_v44 = vpop.f32.mrb[4].mxu0  ;;  %920 = vmatprep.mubr.bf16.mxu0 %v1722_v29  ;;  %v1617_v38 = vld [vmem:[#allocation2 + $0x224] ss:$8 sps:$4 sm:$0xff]  }
 0x137   : > { %890 = vmatprep.subr.bf16.mxu0 %v1557_v40  ;;  %v1445_v46 = vpop.f32.mrb[5].mxu0  ;;  %v1620_v40 = vld [vmem:[#allocation2 + $0x234] ss:$8 sps:$4 sm:$0xff]  }
 0x138   : > { %495 = vmatpush1.bf16.msra.mxu1 %v1540_v41  ;;  %v326_v48 = vpop.f32.mrb[6].mxu0  ;;  %v1618_v41 = vld [vmem:[#allocation2 + $0x230] ss:$8 sps:$4 sm:$0xff]  }
 0x139   : > { %496 = vmatprep.subr.bf16.mxu1 %v1545_v42  ;;  %v1866_v50 = vpack.c.bf16 %v326_v48, %v323_v44  ;;  %v1446_v51 = vpop.f32.mrb[7].mxu0 }
 0x13a   : > { %891 = vmatpush1.bf16.msra.mxu0 %v1555_v43 }
 0x13b   : > { %892 = vmatprep.subr.bf16.mxu0 %v1563_v45  ;;  %v844_v0 = vrot.slane %v1866_v50, 2  ;;  %v1042_v17 = vrot.slane %v1866_v50, 6  ;;  %v943_v35 = vrot.slane %v1866_v50, 4 }
 0x13c   : > { %497 = vmatpush1.bf16.msra.mxu1 %v1543_v47 }
 0x13d   : > { %498 = vmatprep.subr.bf16.mxu1 %v1548_v49 }
 0x13e   : > { %893 = vmatpush1.bf16.msra.mxu0 %v1561_v52  ;;  %v1868_v57 = vpop.f32.mrb[8].mxu0  ;;  %v225_v52 = vld [vmem:[%s1943_s3] sm:$0xff] }
 0x13f   : > { %894 = vmatprep.subr.bf16.mxu0 %v1569_v53  ;;  %v1449_v59 = vpop.f32.mrb[9].mxu0  ;;  %v339_v42 = vpack.c.bf16 %v1868_v57, %v1868_v57 }
 0x140   : > { %499 = vmatpush1.bf16.msra.mxu1 %v1546_v54  ;;  %v334_v61 = vpop.f32.mrb[10].mxu0 }
 0x141   : > { %591 = vmatprep.subr.bf16.mxu1 %v1554_v55  ;;  %v1450_v1 = vpop.f32.mrb[11].mxu0 }
 0x142   : > { %895 = vmatpush1.bf16.msra.mxu0 %v1567_v56 }
 0x143   : > { %1353 = vmatmul.mubr.msk.bf16.vlgmr.msra.gmra.mrb[4].mxu1 %vm388_vm2, %v448_v62  ;;  %1086 = vmatprep.subr.bf16.mxu0 %v1575_v58 }
 0x144   : > { %592 = vmatpush1.bf16.msra.mxu1 %v1552_v60  ;;  %623 = vmatprep.mubr.bf16.mxu1 %v1722_v29 }
 0x145   : > { %593 = vmatprep.subr.bf16.mxu1 %v1560_v63  ;;  %1389 = vmatmul.mubr.msk.bf16.vlgmr.msra.gmra.mrb[16].mxu0 %vm388_vm2, %v844_v0 }
 0x146   : > { %1087 = vmatpush1.bf16.msra.mxu0 %v1573_v2  ;;  %1118 = vmatprep.mubr.bf16.mxu0 %v1722_v29 }
 0x147   : > { %1088 = vmatprep.subr.bf16.mxu0 %v1581_v3 }
 0x148   : > { %594 = vmatpush1.bf16.msra.mxu1 %v1558_v4 }
 0x149   : > { %595 = vmatprep.subr.bf16.mxu1 %v1566_v5 }
 0x14a   : > { %1089 = vmatpush1.bf16.msra.mxu0 %v1579_v6 }
 0x14b   : > { %1090 = vmatprep.subr.bf16.mxu0 %v1587_v7 }
 0x14c   : > { %596 = vmatpush1.bf16.msra.mxu1 %v1564_v8 }
 0x14d   : > { %597 = vmatprep.subr.bf16.mxu1 %v1572_v9 }
 0x14e   : > { %1091 = vmatpush1.bf16.msra.mxu0 %v1585_v10 }
 0x14f   : > { %1092 = vmatprep.subr.bf16.mxu0 %v1593_v11 }
 0x150   : > { %598 = vmatpush1.bf16.msra.mxu1 %v1570_v12 }
 0x151   : > { %788 = vmatprep.subr.bf16.mxu1 %v1578_v13 }
 0x152   : > { %1093 = vmatpush1.bf16.msra.mxu0 %v1591_v14 }
 0x153   : > { %1362 = vmatmul.mubr.msk.bf16.vlgmr.msra.gmra.mrb[8].mxu1 %vm388_vm2, %v547_v16 }
 0x154   : > { %789 = vmatpush1.bf16.msra.mxu1 %v1576_v15  ;;  %820 = vmatprep.mubr.bf16.mxu1 %v1722_v29 }
 0x155   : > { %790 = vmatprep.subr.bf16.mxu1 %v1584_v18  ;;  %1407 = vmatmul.mubr.msk.bf16.vlgmr.msra.gmra.mrb[20].mxu0 %vm388_vm2, %v1042_v17 }
 0x158   : > { %791 = vmatpush1.bf16.msra.mxu1 %v1582_v19 }
 0x159   : > { %792 = vmatprep.subr.bf16.mxu1 %v1590_v20 }
 0x15c   : > { %793 = vmatpush1.bf16.msra.mxu1 %v1588_v21 }
 0x15d   : > { %794 = vmatprep.subr.bf16.mxu1 %v1596_v22 }
 0x160   : > { %795 = vmatpush1.bf16.msra.mxu1 %v1594_v23 }
 0x161   : > { %987 = vmatprep.subr.bf16.mxu1 %v1599_v24 }
 0x163   : > { %1380 = vmatmul.mubr.msk.bf16.vlgmr.msra.gmra.mrb[12].mxu1 %vm388_vm2, %v1866_v50 }
 0x164   : > { %988 = vmatpush1.bf16.msra.mxu1 %v1597_v25  ;;  %1019 = vmatprep.mubr.bf16.mxu1 %v1722_v29 }
 0x165   : > { %989 = vmatprep.subr.bf16.mxu1 %v1602_v26 }
 0x168   : > { %990 = vmatpush1.bf16.msra.mxu1 %v1600_v27 }
 0x169   : > { %991 = vmatprep.subr.bf16.mxu1 %v1605_v28 }
 0x16c   : > { %992 = vmatpush1.bf16.msra.mxu1 %v1603_v30 }
 0x16d   : > { %993 = vmatprep.subr.bf16.mxu1 %v1608_v31 }
 0x170   : > { %994 = vmatpush1.bf16.msra.mxu1 %v1606_v32 }
 0x171   : > { %1184 = vmatprep.subr.bf16.mxu1 %v1611_v33 }
 0x173   : > { %1398 = vmatmul.mubr.msk.bf16.vlgmr.msra.gmra.mrb[16].mxu1 %vm388_vm2, %v943_v35 }
 0x174   : > { %1185 = vmatpush1.bf16.msra.mxu1 %v1609_v34  ;;  %1216 = vmatprep.mubr.bf16.mxu1 %v1722_v29 }
 0x175   : > { %1186 = vmatprep.subr.bf16.mxu1 %v1614_v36 }
 0x178   : > { %1187 = vmatpush1.bf16.msra.mxu1 %v1612_v37 }
 0x179   : > { %1188 = vmatprep.subr.bf16.mxu1 %v1617_v38 }
 0x17c   : > { %1189 = vmatpush1.bf16.msra.mxu1 %v1615_v39 }
 0x17d   : > { %1190 = vmatprep.subr.bf16.mxu1 %v1620_v40 }
 0x180   : > { %1191 = vmatpush1.bf16.msra.mxu1 %v1618_v41 }
 0x183   : > { %1416 = vmatmul.mubr.msk.bf16.vlgmr.msra.gmra.mrb[20].mxu1 %vm388_vm2, %v339_v42 }
 0x206   : > { %v426_v43 = vpop.f32.mrb[0].mxu1 }
 0x207   : > { %v428_v44 = vpop.f32.mrb[1].mxu1 }
 0x208   : > { %v435_v45 = vcombine.low %v426_v43, %v428_v44  ;;  %v430_v46 = vpop.f32.mrb[2].mxu1  ;;  %v724_v29 = vpop.f32.mrb[12].mxu0 }
 0x209   : > { %v431_v47 = vpop.f32.mrb[3].mxu1  ;;  %v726_v48 = vpop.f32.mrb[13].mxu0 }
 0x20a   : > { %v733_v49 = vcombine.low %v724_v29, %v726_v48  ;;  %v728_v50 = vpop.f32.mrb[14].mxu0  ;;  %v437_v55 = vadd.f32 %v435_v45, %v225_v52 }
 0x20b   : > { %v729_v51 = vpop.f32.mrb[15].mxu0 }
 0x216   : > { %v526_v53 = vpop.f32.mrb[4].mxu1 }
 0x217   : > { %v528_v54 = vpop.f32.mrb[5].mxu1 }
 0x218   : > { %v535_v56 = vcombine.low %v526_v53, %v528_v54  ;;  %v530_v57 = vpop.f32.mrb[6].mxu1  ;;  %v922_v58 = vpop.f32.mrb[16].mxu0 }
 0x219   : > { %v531_v59 = vpop.f32.mrb[7].mxu1  ;;  %v924_v60 = vpop.f32.mrb[17].mxu0 }
 0x21a   : > { %v537_v61 = vadd.f32 %v535_v56, %v437_v55  ;;  %v931_v62 = vcombine.low %v922_v58, %v924_v60  ;;  %v926_v63 = vpop.f32.mrb[18].mxu0 }
 0x21b   : > { %v927_v0 = vpop.f32.mrb[19].mxu0 }
 0x226   : > { %v625_v1 = vpop.f32.mrb[8].mxu1 }
 0x227   : > { %v627_v2 = vpop.f32.mrb[9].mxu1 }
 0x228   : > { %v634_v3 = vcombine.low %v625_v1, %v627_v2  ;;  %v629_v4 = vpop.f32.mrb[10].mxu1  ;;  %v1120_v5 = vpop.f32.mrb[20].mxu0 }
 0x229   : > { %v630_v6 = vpop.f32.mrb[11].mxu1  ;;  %v1122_v7 = vpop.f32.mrb[21].mxu0 }
 0x22a   : > { %v636_v8 = vadd.f32 %v634_v3, %v537_v61  ;;  %v1129_v9 = vcombine.low %v1120_v5, %v1122_v7  ;;  %v1124_v10 = vpop.f32.mrb[22].mxu0 }
 0x22b   : > { %v1125_v11 = vpop.f32.mrb[23].mxu0 }
 0x22c   : > { %v735_v12 = vadd.f32 %v733_v49, %v636_v8 }
 0x236   : > { %v822_v13 = vpop.f32.mrb[12].mxu1 }
 0x237   : > { %v824_v14 = vpop.f32.mrb[13].mxu1 }
 0x238   : > { %v831_v15 = vcombine.low %v822_v13, %v824_v14  ;;  %v826_v16 = vpop.f32.mrb[14].mxu1 }
 0x239   : > { %v827_v17 = vpop.f32.mrb[15].mxu1 }
 0x23a   : > { %v833_v18 = vadd.f32 %v831_v15, %v735_v12 }
 0x23c   : > { %v933_v19 = vadd.f32 %v931_v62, %v833_v18 }
 0x246   : > { %v1021_v20 = vpop.f32.mrb[16].mxu1 }
 0x247   : > { %v1023_v21 = vpop.f32.mrb[17].mxu1 }
 0x248   : > { %v1030_v22 = vcombine.low %v1021_v20, %v1023_v21  ;;  %v1025_v23 = vpop.f32.mrb[18].mxu1 }
 0x249   : > { %v1026_v24 = vpop.f32.mrb[19].mxu1 }
 0x24a   : > { %v1032_v25 = vadd.f32 %v1030_v22, %v933_v19 }
 0x24c   : > { %v1131_v26 = vadd.f32 %v1129_v9, %v1032_v25 }
 0x256   : > { %v1218_v27 = vpop.f32.mrb[20].mxu1 }
 0x257   : > { %v1220_v28 = vpop.f32.mrb[21].mxu1 }
 0x258   : > { %v1227_v30 = vcombine.low %v1218_v27, %v1220_v28  ;;  %v1222_v31 = vpop.f32.mrb[22].mxu1 }
 0x259   : > { %v1223_v32 = vpop.f32.mrb[23].mxu1 }
 0x25a   : > { %v1229_v33 = vadd.f32 %v1227_v30, %v1131_v26 }
 0x25c   : > { %1230 = vst [vmem:[%s205_s22] sm:$0xff] %v1229_v33 }
 0x25d   : > { %1662 = shalt.err (!%p1659_p7)
}
 0x25e   : > { %s1663_s8 = scalar_lea.hbm %s1898_s30, 128  ;;  %s1667_s11 = scalar_lea.hbm %s1944_s4, 512 }
 0x25f   : > { %p1664_p8 = scmp.ne.s32.totalorder %s1898_s30, %s1663_s8  ;;  %p1668_p1 = scmp.lt.u32.totalorder %s1898_s30, %s1944_s4 }
 0x260   : > { %p1669_p0 = scmp.lt.u32.totalorder %s1667_s11, %s1663_s8  ;;  %p1671_p6 = scmp.lt.u32.totalorder %s1663_s8, %s1898_s30 }
 0x261   : > { %p1665_p11 = pnand %p1664_p8, %p1955_p9 }
 0x262   : > { %p1670_p5 = por %p1669_p0, %p1668_p1 }
 0x263   : > { %p1666_p13 = pneg %p1665_p11 }
 0x264   : > { %p1672_p10 = por %p1671_p6, %p1670_p5 }
 0x266   : > { %p1673_p12 = pnand %p1672_p10, %p1666_p13 }
 0x268   : > { %1676 = shalt.err (!%p1673_p12)
}
 0x269   : > { %1455 = dma.vmem_to_hbm [thread:$0]  (%p1955_p9), %s1900_s23, 128, %s1898_s30, %s1232_s27  }
 0x26a PF: > { %p1467_p2 = scmp.ge.s32.totalorder %s1715_s18, 2  ;;  %s1258_s14 = sand.u32 1, %s1703_s15  }
 0x26b   : > { %p1956_p3 = scmp.ne.s32.totalorder %s1949_s26, 0  ;;  %s1259_s20 = scalar_lea.sflag [#allocation4], %s1258_s14 }
 0x26d   : > { %p1462_p4 = pnand %p1467_p2, %p1956_p3 }
 0x26f   : > { %1698 = dma.done.wait (!%p1462_p4), %s1259_s20, 128  }
 0x270   : > { %1700 = vsyncadd (!%p1462_p4), %s1259_s20, 4294967168  ;;  %p15_p7 = scmp.ge.s32.totalorder %s1774_s21, 6   ;;  %s1957_s15 = smov %s1707_s16 }
 0x271   : > { %s1958_s16 = smov %s1711_s17  ;;  %s1959_s17 = smov %s1785_s24 }
 0x272   : > { %s1960_s18 = smov %s1774_s21  ;;  %17 = sbr.rel (!%p15_p7) target bundleno = 4 (0x4), region = 84 }
 0x279   :  { %1264 = vsyncpa [#allocation3], 1 }
 0x27a   :  { %1266 = vsyncpa [#allocation3 + $0x1], 1 }
 0x27b   :  { %1267 = vsyncpa [#allocation4], 1 }
 0x27c   :  { %1269 = vsyncpa [#allocation4 + $0x1], 1 }

</bundles_post_ra>
